<compile_context>
chip_gen: v5e
topology: v5e:2x2
jax: 0.10.0
libtpu: 0.0.40
codegen_flags: <defaults>
</compile_context>

<pallas_src>
import jax
import jax.numpy as jnp
from jax import lax
from jax.experimental import pallas as pl
from jax.experimental.pallas import tpu as pltpu

_SQRT_HALF = 0.7071067811865476
_NEG_BIG = -1e30  # logit bias for padded class columns -> exp underflows to 0


def _round_up(v, m):
    return ((v + m - 1) // m) * m


def _make_fused_kernel(col_ranges, c_sum_pad):
    """Build the fused all-heads kernel.

    col_ranges: static tuple of (start, stop) column ranges (one per attribute
                head) inside the packed class slab of width c_sum_pad.
    """

    def kernel(x_ref, w1_ref, b1_ref, w2_ref, b2_ref, out_ref):
        # x:  (tm, in_dim)              f32 (cast to bf16 here, read from HBM once)
        # w1: (in_dim, n_attr*P_pad)    bf16   b1: (1, n_attr*P_pad) f32
        # w2: (n_attr*P_pad, C_sum_pad) bf16   b2: (1, C_sum_pad)    f32
        # out:(tm, C_sum_pad)           f32 (lane-dense slab)
        x = x_ref[...].astype(jnp.bfloat16)

        # One wide matmul for every head's projection.
        h = jnp.dot(x, w1_ref[...], preferred_element_type=jnp.float32) + b1_ref[...]

        # Exact erf-based GELU (torch.nn.GELU() default), in f32.
        h = 0.5 * h * (1.0 + lax.erf(h * _SQRT_HALF))

        # Block-diagonal W2 packs every head's real class columns densely into
        # one lane-dense logits slab.  Padded columns carry a -1e30 bias.
        logits = jnp.dot(h.astype(jnp.bfloat16), w2_ref[...],
                         preferred_element_type=jnp.float32) + b2_ref[...]

        # Per-head (segmented) softmax over the packed slab.  Head membership
        # masks are static, so this is a short unrolled loop of VALU selects
        # and XLU row reductions -- no cross-lane shuffles.
        col = lax.broadcasted_iota(jnp.int32, (1, c_sum_pad), 1)

        m_b = jnp.zeros_like(logits)
        for lo, hi in col_ranges:
            mask = (col >= lo) & (col < hi)
            mk = jnp.max(jnp.where(mask, logits, _NEG_BIG), axis=-1, keepdims=True)
            m_b = jnp.where(mask, mk, m_b)

        e = jnp.exp(logits - m_b)  # padded columns: exp(-1e30) == 0 exactly

        d_b = jnp.ones_like(logits)  # 1.0 on padded columns -> 0/1 == 0
        for lo, hi in col_ranges:
            mask = (col >= lo) & (col < hi)
            sk = jnp.sum(jnp.where(mask, e, 0.0), axis=-1, keepdims=True)
            d_b = jnp.where(mask, sk, d_b)

        # Exact division so each head's probabilities sum to 1 to f32 precision.
        out_ref[...] = (e / d_b).astype(out_ref.dtype)

    return kernel


class AttributeClassifierPallas:
    """JAX/Pallas equivalent of Attribute_Classifier (independent projections, no BN)."""

    def __init__(self, dict_attribute, in_dim, projected_dim, key):
        self.dict_attribute = dict_attribute
        self.attr_keys = list(dict_attribute.keys())
        self.num_attribute_class = len(self.attr_keys)
        self.num_attribute_all = sum(len(v) for v in dict_attribute.values())
        self.in_dim = in_dim
        self.projected_dim = projected_dim
        self.c_sizes = tuple(len(dict_attribute[k]) + 1 for k in self.attr_keys)

        n_attr = self.num_attribute_class
        self.p_pad = _round_up(projected_dim, 128)
        c_sum = sum(self.c_sizes)
        self.c_sum_pad = _round_up(c_sum, 128)

        # Static dense-packed class-column ranges, one per head.
        offs, o = [], 0
        for c in self.c_sizes:
            offs.append(o)
            o += c
        self.col_ranges = tuple(
            (offs[i], offs[i] + self.c_sizes[i]) for i in range(n_attr))

        std = 0.02
        # Canonical (unpacked, f32) parameters -- used by the reference check.
        self.params = []

        w1_cat = jnp.zeros((in_dim, n_attr * self.p_pad), jnp.float32)
        b1_cat = jnp.zeros((1, n_attr * self.p_pad), jnp.float32)
        w2_bd = jnp.zeros((n_attr * self.p_pad, self.c_sum_pad), jnp.float32)
        b2_cat = jnp.full((1, self.c_sum_pad), _NEG_BIG, jnp.float32)

        for i in range(n_attr):
            c = self.c_sizes[i]
            key, k1, k2 = jax.random.split(key, 3)
            # trunc_normal_(std=0.02) ~ truncated normal
            w1 = std * jax.random.truncated_normal(
                k1, -2.0, 2.0, (in_dim, projected_dim), jnp.float32)
            b1 = jnp.zeros((1, projected_dim), jnp.float32)
            w2 = std * jax.random.truncated_normal(
                k2, -2.0, 2.0, (projected_dim, c), jnp.float32)
            b2 = jnp.zeros((1, c), jnp.float32)
            self.params.append((w1, b1, w2, b2))

            p0 = i * self.p_pad
            w1_cat = w1_cat.at[:, p0:p0 + projected_dim].set(w1)
            b1_cat = b1_cat.at[:, p0:p0 + projected_dim].set(b1)
            lo, hi = self.col_ranges[i]
            w2_bd = w2_bd.at[p0:p0 + projected_dim, lo:hi].set(w2)
            b2_cat = b2_cat.at[:, lo:hi].set(b2)

        # Matmul operands stored as bf16 (f32 accumulation in-kernel); biases f32.
        self.w1_cat = w1_cat.astype(jnp.bfloat16)
        self.b1_cat = b1_cat
        self.w2_bd = w2_bd.astype(jnp.bfloat16)
        self.b2_cat = b2_cat

        self._kernel = _make_fused_kernel(self.col_ranges, self.c_sum_pad)
        self._forward = jax.jit(self._forward_impl)

    def _forward_impl(self, x):
        B, in_dim = x.shape
        assert in_dim == self.in_dim
        n_attr = self.num_attribute_class
        p_pad, c_sum_pad = self.p_pad, self.c_sum_pad

        # Batch tile: multiple of 16 rows (bf16 packs two rows per sublane),
        # up to 512 rows per tile so large batches pipeline HBM<->VMEM well.
        tm = min(_round_up(B, 16), 512)
        b_pad = _round_up(B, tm)
        nb = b_pad // tm

        # Row padding only (no dtype cast, no lane pad): x stays f32 in HBM and
        # is cast to bf16 inside the kernel, so it is read exactly once.
        xp = x if b_pad == B else jnp.pad(x, ((0, b_pad - B), (0, 0)))

        flops = 2 * b_pad * n_attr * p_pad * (in_dim + c_sum_pad)
        transcendentals = b_pad * (n_attr * p_pad + c_sum_pad)  # erf + exp
        # Weights/biases are DMA'd once (constant block index); x & out once.
        bytes_accessed = (
            xp.size * 4
            + self.w1_cat.size * 2 + self.w2_bd.size * 2
            + self.b1_cat.size * 4 + self.b2_cat.size * 4
            + b_pad * c_sum_pad * 4
        )

        out = pl.pallas_call(
            self._kernel,
            out_shape=jax.ShapeDtypeStruct((b_pad, c_sum_pad), jnp.float32),
            grid=(nb,),
            in_specs=[
                pl.BlockSpec((tm, in_dim), lambda b: (b, 0)),
                # Constant block index -> weights stay VMEM-resident across the
                # whole batch sweep (fetched from HBM once).
                pl.BlockSpec((in_dim, n_attr * p_pad), lambda b: (0, 0)),
                pl.BlockSpec((1, n_attr * p_pad), lambda b: (0, 0)),
                pl.BlockSpec((n_attr * p_pad, c_sum_pad), lambda b: (0, 0)),
                pl.BlockSpec((1, c_sum_pad), lambda b: (0, 0)),
            ],
            out_specs=pl.BlockSpec((tm, c_sum_pad), lambda b: (b, 0)),
            compiler_params=pltpu.CompilerParams(
                dimension_semantics=("parallel",),
                # Safe budget on all generations (v7x physical VMEM is 64 MiB).
                vmem_limit_bytes=32 * 1024 * 1024,
            ),
            cost_estimate=pl.CostEstimate(
                flops=int(flops),
                transcendentals=int(transcendentals),
                bytes_accessed=int(bytes_accessed),
            ),
        )(xp, self.w1_cat, self.b1_cat, self.w2_bd, self.b2_cat)

        # Slice the densely packed slab back into per-attribute tensors.
        outs = []
        for lo, hi in self.col_ranges:
            outs.append(out[:B, lo:hi])
        return tuple(outs)

    def __call__(self, x):
        return list(self._forward(x))


def _reference(x, params):
    """Pure-JAX reference mirroring the kernel numerics (bf16 matmul inputs, f32 acc)."""
    outs = []
    xb = x.astype(jnp.bfloat16)
    for (w1, b1, w2, b2) in params:
        h = jnp.dot(xb, w1.astype(jnp.bfloat16),
                    preferred_element_type=jnp.float32) + b1
        h = 0.5 * h * (1.0 + lax.erf(h * _SQRT_HALF))
        logits = jnp.dot(h.astype(jnp.bfloat16), w2.astype(jnp.bfloat16),
                         preferred_element_type=jnp.float32) + b2
        outs.append(jax.nn.softmax(logits, axis=-1))
    return outs


if __name__ == "__main__":
    dict_attribute = {
        "color": ["red", "green", "blue"],           # -> 4 classes (incl. "none")
        "shape": ["circle", "square"],               # -> 3 classes
        "size": ["small", "medium", "large", "xl"],  # -> 5 classes
    }
    in_dim = 32
    projected_dim = 32
    batch = 8

    key = jax.random.PRNGKey(0)
    key, xkey, pkey = jax.random.split(key, 3)
    x = jax.random.normal(xkey, (batch, in_dim), jnp.float32)

    model = AttributeClassifierPallas(dict_attribute, in_dim, projected_dim, pkey)

    probs = model(x)
    probs = [jax.block_until_ready(p) for p in probs]

    # Sanity check against a pure-JAX reference that mirrors the kernel numerics.
    refs = _reference(x, model.params)
    for p, r, name in zip(probs, refs, dict_attribute.keys()):
        assert p.shape == (batch, len(dict_attribute[name]) + 1), (p.shape, name)
        assert jnp.allclose(p, r, atol=5e-3, rtol=0.0), f"mismatch on {name}"
        # each row must sum to (approximately) 1 -- exact division in-kernel
        assert jnp.allclose(jnp.sum(p, axis=-1), 1.0, atol=3e-3), name

    print("KERNEL_OK")
</pallas_src>

<mosaic_0001>
module attributes {stable_mosaic.version = 11 : i64} {
  func.func @kernel(%arg0: i32, %arg1: memref<16x32xf32, #tpu.memory_space<vmem>>, %arg2: memref<32x384xbf16, #tpu.memory_space<vmem>>, %arg3: memref<1x384xf32, #tpu.memory_space<vmem>>, %arg4: memref<384x128xbf16, #tpu.memory_space<vmem>>, %arg5: memref<1x128xf32, #tpu.memory_space<vmem>>, %arg6: memref<16x128xf32, #tpu.memory_space<vmem>>) attributes {dimension_semantics = [#tpu.dimension_semantics<parallel>], iteration_bounds = array<i64: 1>, scalar_prefetch = 0 : i64, scratch_operands = 0 : i64, tpu.core_type = #tpu.core_type<tc>, window_params = [{transform_indices = @transform_0, window_bounds = array<i64: 16, 32>}, {pipeline_mode = #tpu.pipeline_mode<synchronous>, transform_indices = @transform_1, window_bounds = array<i64: 32, 384>}, {pipeline_mode = #tpu.pipeline_mode<synchronous>, transform_indices = @transform_2, window_bounds = array<i64: 1, 384>}, {pipeline_mode = #tpu.pipeline_mode<synchronous>, transform_indices = @transform_3, window_bounds = array<i64: 384, 128>}, {pipeline_mode = #tpu.pipeline_mode<synchronous>, transform_indices = @transform_4, window_bounds = array<i64: 1, 128>}, {transform_indices = @transform_5, window_bounds = array<i64: 16, 128>}]} {
    %c0 = arith.constant 0 : index
    %c0_0 = arith.constant 0 : index
    %0 = vector.load %arg1[%c0, %c0_0] : memref<16x32xf32, #tpu.memory_space<vmem>>, vector<16x32xf32>
    %1 = arith.truncf %0 : vector<16x32xf32> to vector<16x32xbf16>
    %c0_1 = arith.constant 0 : index
    %c0_2 = arith.constant 0 : index
    %2 = vector.load %arg2[%c0_1, %c0_2] : memref<32x384xbf16, #tpu.memory_space<vmem>>, vector<32x384xbf16>
    %cst = arith.constant dense<0.000000e+00> : vector<16x384xf32>
    %3 = tpu.matmul %1, %2, %cst {dimension_numbers = #tpu.dot_dimension_numbers<[1], [0], [0], [1], [0, 0, 1, 1], [], []>} : vector<16x32xbf16>, vector<32x384xbf16>, vector<16x384xf32> -> vector<16x384xf32>
    %c0_3 = arith.constant 0 : index
    %c0_4 = arith.constant 0 : index
    %4 = vector.load %arg3[%c0_3, %c0_4] : memref<1x384xf32, #tpu.memory_space<vmem>>, vector<1x384xf32>
    %5 = vector.broadcast %4 : vector<1x384xf32> to vector<16x384xf32>
    %6 = arith.addf %3, %5 : vector<16x384xf32>
    %cst_5 = arith.constant 5.000000e-01 : f32
    %7 = vector.broadcast %cst_5 : f32 to vector<16x384xf32>
    %8 = arith.mulf %7, %6 : vector<16x384xf32>
    %cst_6 = arith.constant 0.707106769 : f32
    %9 = vector.broadcast %cst_6 : f32 to vector<16x384xf32>
    %10 = arith.mulf %6, %9 : vector<16x384xf32>
    %11 = math.erf %10 : vector<16x384xf32>
    %cst_7 = arith.constant 1.000000e+00 : f32
    %12 = vector.broadcast %cst_7 : f32 to vector<16x384xf32>
    %13 = arith.addf %12, %11 : vector<16x384xf32>
    %14 = arith.mulf %8, %13 : vector<16x384xf32>
    %15 = arith.truncf %14 : vector<16x384xf32> to vector<16x384xbf16>
    %c0_8 = arith.constant 0 : index
    %c0_9 = arith.constant 0 : index
    %16 = vector.load %arg4[%c0_8, %c0_9] : memref<384x128xbf16, #tpu.memory_space<vmem>>, vector<384x128xbf16>
    %cst_10 = arith.constant dense<0.000000e+00> : vector<16x128xf32>
    %17 = tpu.matmul %15, %16, %cst_10 {dimension_numbers = #tpu.dot_dimension_numbers<[1], [0], [0], [1], [0, 0, 1, 1], [], []>} : vector<16x384xbf16>, vector<384x128xbf16>, vector<16x128xf32> -> vector<16x128xf32>
    %c0_11 = arith.constant 0 : index
    %c0_12 = arith.constant 0 : index
    %18 = vector.load %arg5[%c0_11, %c0_12] : memref<1x128xf32, #tpu.memory_space<vmem>>, vector<1x128xf32>
    %19 = vector.broadcast %18 : vector<1x128xf32> to vector<16x128xf32>
    %20 = arith.addf %17, %19 : vector<16x128xf32>
    %21 = tpu.iota {dimensions = array<i32: 1>} : vector<1x128xi32>
    %cst_13 = arith.constant 0.000000e+00 : f32
    %22 = vector.broadcast %cst_13 : f32 to vector<16x128xf32>
    %c0_i32 = arith.constant 0 : i32
    %23 = vector.broadcast %c0_i32 : i32 to vector<1x128xi32>
    %24 = arith.cmpi sge, %21, %23 : vector<1x128xi32>
    %c4_i32 = arith.constant 4 : i32
    %25 = vector.broadcast %c4_i32 : i32 to vector<1x128xi32>
    %26 = arith.cmpi slt, %21, %25 : vector<1x128xi32>
    %27 = arith.andi %24, %26 : vector<1x128xi1>
    %cst_14 = arith.constant -1.000000e+30 : f32
    %28 = vector.shape_cast %27 : vector<1x128xi1> to vector<1x128xi1>
    %29 = vector.broadcast %28 : vector<1x128xi1> to vector<16x128xi1>
    %30 = vector.broadcast %cst_14 : f32 to vector<16x128xf32>
    %31 = arith.select %29, %20, %30 : vector<16x128xi1>, vector<16x128xf32>
    %cst_15 = arith.constant dense<0xFF800000> : vector<16xf32>
    %32 = vector.multi_reduction <maximumf>, %31, %cst_15 [1] : vector<16x128xf32> to vector<16xf32>
    %33 = vector.shape_cast %32 : vector<16xf32> to vector<16x1xf32>
    %34 = vector.shape_cast %27 : vector<1x128xi1> to vector<1x128xi1>
    %35 = vector.broadcast %34 : vector<1x128xi1> to vector<16x128xi1>
    %36 = vector.shape_cast %33 : vector<16x1xf32> to vector<16x1xf32>
    %37 = vector.broadcast %36 : vector<16x1xf32> to vector<16x128xf32>
    %38 = arith.select %35, %37, %22 : vector<16x128xi1>, vector<16x128xf32>
    %c4_i32_16 = arith.constant 4 : i32
    %39 = vector.broadcast %c4_i32_16 : i32 to vector<1x128xi32>
    %40 = arith.cmpi sge, %21, %39 : vector<1x128xi32>
    %c7_i32 = arith.constant 7 : i32
    %41 = vector.broadcast %c7_i32 : i32 to vector<1x128xi32>
    %42 = arith.cmpi slt, %21, %41 : vector<1x128xi32>
    %43 = arith.andi %40, %42 : vector<1x128xi1>
    %cst_17 = arith.constant -1.000000e+30 : f32
    %44 = vector.shape_cast %43 : vector<1x128xi1> to vector<1x128xi1>
    %45 = vector.broadcast %44 : vector<1x128xi1> to vector<16x128xi1>
    %46 = vector.broadcast %cst_17 : f32 to vector<16x128xf32>
    %47 = arith.select %45, %20, %46 : vector<16x128xi1>, vector<16x128xf32>
    %cst_18 = arith.constant dense<0xFF800000> : vector<16xf32>
    %48 = vector.multi_reduction <maximumf>, %47, %cst_18 [1] : vector<16x128xf32> to vector<16xf32>
    %49 = vector.shape_cast %48 : vector<16xf32> to vector<16x1xf32>
    %50 = vector.shape_cast %43 : vector<1x128xi1> to vector<1x128xi1>
    %51 = vector.broadcast %50 : vector<1x128xi1> to vector<16x128xi1>
    %52 = vector.shape_cast %49 : vector<16x1xf32> to vector<16x1xf32>
    %53 = vector.broadcast %52 : vector<16x1xf32> to vector<16x128xf32>
    %54 = arith.select %51, %53, %38 : vector<16x128xi1>, vector<16x128xf32>
    %c7_i32_19 = arith.constant 7 : i32
    %55 = vector.broadcast %c7_i32_19 : i32 to vector<1x128xi32>
    %56 = arith.cmpi sge, %21, %55 : vector<1x128xi32>
    %c12_i32 = arith.constant 12 : i32
    %57 = vector.broadcast %c12_i32 : i32 to vector<1x128xi32>
    %58 = arith.cmpi slt, %21, %57 : vector<1x128xi32>
    %59 = arith.andi %56, %58 : vector<1x128xi1>
    %cst_20 = arith.constant -1.000000e+30 : f32
    %60 = vector.shape_cast %59 : vector<1x128xi1> to vector<1x128xi1>
    %61 = vector.broadcast %60 : vector<1x128xi1> to vector<16x128xi1>
    %62 = vector.broadcast %cst_20 : f32 to vector<16x128xf32>
    %63 = arith.select %61, %20, %62 : vector<16x128xi1>, vector<16x128xf32>
    %cst_21 = arith.constant dense<0xFF800000> : vector<16xf32>
    %64 = vector.multi_reduction <maximumf>, %63, %cst_21 [1] : vector<16x128xf32> to vector<16xf32>
    %65 = vector.shape_cast %64 : vector<16xf32> to vector<16x1xf32>
    %66 = vector.shape_cast %59 : vector<1x128xi1> to vector<1x128xi1>
    %67 = vector.broadcast %66 : vector<1x128xi1> to vector<16x128xi1>
    %68 = vector.shape_cast %65 : vector<16x1xf32> to vector<16x1xf32>
    %69 = vector.broadcast %68 : vector<16x1xf32> to vector<16x128xf32>
    %70 = arith.select %67, %69, %54 : vector<16x128xi1>, vector<16x128xf32>
    %71 = arith.subf %20, %70 : vector<16x128xf32>
    %72 = math.exp %71 : vector<16x128xf32>
    %cst_22 = arith.constant 1.000000e+00 : f32
    %73 = vector.broadcast %cst_22 : f32 to vector<16x128xf32>
    %c0_i32_23 = arith.constant 0 : i32
    %74 = vector.broadcast %c0_i32_23 : i32 to vector<1x128xi32>
    %75 = arith.cmpi sge, %21, %74 : vector<1x128xi32>
    %c4_i32_24 = arith.constant 4 : i32
    %76 = vector.broadcast %c4_i32_24 : i32 to vector<1x128xi32>
    %77 = arith.cmpi slt, %21, %76 : vector<1x128xi32>
    %78 = arith.andi %75, %77 : vector<1x128xi1>
    %cst_25 = arith.constant 0.000000e+00 : f32
    %79 = vector.shape_cast %78 : vector<1x128xi1> to vector<1x128xi1>
    %80 = vector.broadcast %79 : vector<1x128xi1> to vector<16x128xi1>
    %81 = vector.broadcast %cst_25 : f32 to vector<16x128xf32>
    %82 = arith.select %80, %72, %81 : vector<16x128xi1>, vector<16x128xf32>
    %cst_26 = arith.constant dense<0.000000e+00> : vector<16xf32>
    %83 = vector.multi_reduction <add>, %82, %cst_26 [1] : vector<16x128xf32> to vector<16xf32>
    %84 = vector.shape_cast %83 : vector<16xf32> to vector<16x1xf32>
    %85 = vector.shape_cast %78 : vector<1x128xi1> to vector<1x128xi1>
    %86 = vector.broadcast %85 : vector<1x128xi1> to vector<16x128xi1>
    %87 = vector.shape_cast %84 : vector<16x1xf32> to vector<16x1xf32>
    %88 = vector.broadcast %87 : vector<16x1xf32> to vector<16x128xf32>
    %89 = arith.select %86, %88, %73 : vector<16x128xi1>, vector<16x128xf32>
    %c4_i32_27 = arith.constant 4 : i32
    %90 = vector.broadcast %c4_i32_27 : i32 to vector<1x128xi32>
    %91 = arith.cmpi sge, %21, %90 : vector<1x128xi32>
    %c7_i32_28 = arith.constant 7 : i32
    %92 = vector.broadcast %c7_i32_28 : i32 to vector<1x128xi32>
    %93 = arith.cmpi slt, %21, %92 : vector<1x128xi32>
    %94 = arith.andi %91, %93 : vector<1x128xi1>
    %cst_29 = arith.constant 0.000000e+00 : f32
    %95 = vector.shape_cast %94 : vector<1x128xi1> to vector<1x128xi1>
    %96 = vector.broadcast %95 : vector<1x128xi1> to vector<16x128xi1>
    %97 = vector.broadcast %cst_29 : f32 to vector<16x128xf32>
    %98 = arith.select %96, %72, %97 : vector<16x128xi1>, vector<16x128xf32>
    %cst_30 = arith.constant dense<0.000000e+00> : vector<16xf32>
    %99 = vector.multi_reduction <add>, %98, %cst_30 [1] : vector<16x128xf32> to vector<16xf32>
    %100 = vector.shape_cast %99 : vector<16xf32> to vector<16x1xf32>
    %101 = vector.shape_cast %94 : vector<1x128xi1> to vector<1x128xi1>
    %102 = vector.broadcast %101 : vector<1x128xi1> to vector<16x128xi1>
    %103 = vector.shape_cast %100 : vector<16x1xf32> to vector<16x1xf32>
    %104 = vector.broadcast %103 : vector<16x1xf32> to vector<16x128xf32>
    %105 = arith.select %102, %104, %89 : vector<16x128xi1>, vector<16x128xf32>
    %c7_i32_31 = arith.constant 7 : i32
    %106 = vector.broadcast %c7_i32_31 : i32 to vector<1x128xi32>
    %107 = arith.cmpi sge, %21, %106 : vector<1x128xi32>
    %c12_i32_32 = arith.constant 12 : i32
    %108 = vector.broadcast %c12_i32_32 : i32 to vector<1x128xi32>
    %109 = arith.cmpi slt, %21, %108 : vector<1x128xi32>
    %110 = arith.andi %107, %109 : vector<1x128xi1>
    %cst_33 = arith.constant 0.000000e+00 : f32
    %111 = vector.shape_cast %110 : vector<1x128xi1> to vector<1x128xi1>
    %112 = vector.broadcast %111 : vector<1x128xi1> to vector<16x128xi1>
    %113 = vector.broadcast %cst_33 : f32 to vector<16x128xf32>
    %114 = arith.select %112, %72, %113 : vector<16x128xi1>, vector<16x128xf32>
    %cst_34 = arith.constant dense<0.000000e+00> : vector<16xf32>
    %115 = vector.multi_reduction <add>, %114, %cst_34 [1] : vector<16x128xf32> to vector<16xf32>
    %116 = vector.shape_cast %115 : vector<16xf32> to vector<16x1xf32>
    %117 = vector.shape_cast %110 : vector<1x128xi1> to vector<1x128xi1>
    %118 = vector.broadcast %117 : vector<1x128xi1> to vector<16x128xi1>
    %119 = vector.shape_cast %116 : vector<16x1xf32> to vector<16x1xf32>
    %120 = vector.broadcast %119 : vector<16x1xf32> to vector<16x128xf32>
    %121 = arith.select %118, %120, %105 : vector<16x128xi1>, vector<16x128xf32>
    %122 = arith.divf %72, %121 : vector<16x128xf32>
    %c0_35 = arith.constant 0 : index
    %c0_36 = arith.constant 0 : index
    %123 = vector.load %arg6[%c0_35, %c0_36] : memref<16x128xf32, #tpu.memory_space<vmem>>, vector<16x128xf32>
    tpu.vector_store %arg6[%c0_35, %c0_36], %122 {strides = array<i32>} : memref<16x128xf32, #tpu.memory_space<vmem>>, vector<16x128xf32>,
    return
  }
  func.func @transform_0(%arg0: i32) -> (i32, i32) {
    %c0_i32 = arith.constant 0 : i32
    %c0_i32_0 = arith.constant 0 : i32
    return %arg0, %c0_i32 : i32, i32
  }
  func.func @transform_1(%arg0: i32) -> (i32, i32) {
    %c0_i32 = arith.constant 0 : i32
    %c0_i32_0 = arith.constant 0 : i32
    %c0_i32_1 = arith.constant 0 : i32
    return %c0_i32, %c0_i32_0 : i32, i32
  }
  func.func @transform_2(%arg0: i32) -> (i32, i32) {
    %c0_i32 = arith.constant 0 : i32
    %c0_i32_0 = arith.constant 0 : i32
    %c0_i32_1 = arith.constant 0 : i32
    return %c0_i32, %c0_i32_0 : i32, i32
  }
  func.func @transform_3(%arg0: i32) -> (i32, i32) {
    %c0_i32 = arith.constant 0 : i32
    %c0_i32_0 = arith.constant 0 : i32
    %c0_i32_1 = arith.constant 0 : i32
    return %c0_i32, %c0_i32_0 : i32, i32
  }
  func.func @transform_4(%arg0: i32) -> (i32, i32) {
    %c0_i32 = arith.constant 0 : i32
    %c0_i32_0 = arith.constant 0 : i32
    %c0_i32_1 = arith.constant 0 : i32
    return %c0_i32, %c0_i32_0 : i32, i32
  }
  func.func @transform_5(%arg0: i32) -> (i32, i32) {
    %c0_i32 = arith.constant 0 : i32
    %c0_i32_0 = arith.constant 0 : i32
    return %arg0, %c0_i32 : i32, i32
  }
}

</mosaic_0001>

<bundles_post_ra>
// kernel: _forward_impl.1
= control target key start
LH: loop header
LB: loop body
LE: loop exit
PB: predicated region body
PF: predicated region fallthrough
CT: control target
= control target key end

     0   :  { %10 = vsyncpa [#allocation3], 0  ;;  %s1324_s0 = inlined_call_operand.vmem [shape: f32[16,32], index: 0, kind: input, shape index: {}]   ;;  %s1325_s1 = inlined_call_operand.hbm [shape: bf16[32,384], index: 1, kind: input, shape index: {}]   ;;  %s1326_s2 = inlined_call_operand.vmem [shape: f32[1,384], index: 2, kind: input, shape index: {}]   ;;  %s1327_s3 = inlined_call_operand.hbm [shape: bf16[384,128], index: 3, kind: input, shape index: {}]   ;;  %s1328_s4 = inlined_call_operand.vmem [shape: f32[1,128], index: 4, kind: input, shape index: {}]   ;;  %s1329_s5 = inlined_call_operand.vmem [shape: f32[16,128], index: 5, kind: output, shape index: {}]  }
   0x1   :  { %s18_s20 = sshll.u32 %s1325_s1, 4  ;;  %s19_s20 = int_to_ptr.hbm [resolvable:$true] %s18_s20 }
   0x2   :  { %11 = vsyncpa [#allocation5], 0  ;;  %s1002_s21 = smov [#allocation2]   ;;  %s33_s25 = sshll.u32 %s1327_s3, 4  ;;  %s34_s25 = int_to_ptr.hbm [resolvable:$true] %s33_s25 }
   0x3   :  { %s20_s22 = sshll.u32 %s1002_s21, 4  ;;  %s1003_s26 = smov 192   ;;  %s21_s22 = int_to_ptr.vmem [resolvable:$true] %s20_s22 }
   0x4   :  { %s1004_s27 = smov 12   ;;  %s1005_s28 = smov [#allocation4]  }
   0x5   :  { %26 = dma.hbm_to_vmem [thread:$0]  %s19_s20, 768, %s21_s22, [#allocation3], %s1003_s26, %s1003_s26, %s1004_s27  }
   0x6   :  { %s35_s29 = sshll.u32 %s1005_s28, 4  ;;  %s1006_s30 = smov 64   ;;  %s36_s29 = int_to_ptr.vmem [resolvable:$true] %s35_s29 }
   0x7   :  { %s1007_s6 = smov 4  }
   0x8   :  { %41 = dma.hbm_to_vmem [thread:$0]  %s34_s25, 3072, %s36_s29, [#allocation5], %s1006_s30, %s1006_s30, %s1007_s6  }
   0x9   :  { %998 = dma.done.wait [#allocation3], 768  }
   0xa   :  { %999 = vsyncadd [#allocation3], 4294966528 }
   0xb   :  { %1000 = dma.done.wait [#allocation5], 3072  }
   0xc   :  { %1001 = vsyncadd [#allocation5], 4294964224  ;;  %v778_v0 = vld [vmem:[#allocation2 + $0x18] sm:$0xf]  ;;  %v897_v1 = vld [vmem:[#allocation2 + $0x20] sm:$0xf0] }
   0xd   :  { %v896_v2 = vld [vmem:[#allocation2 + $0x1c] sm:$0xf]  ;;  %v779_v3 = vor.u32 %v897_v1, %v778_v0  ;;  %v780_v4 = vld [vmem:[#allocation2 + $0x24] sm:$0xf0]  ;;  %v766_v5 = vld [vmem:[#allocation2] sm:$0xf] }
   0xe   :  { %v894_v6 = vld [vmem:[#allocation2 + $0x8] sm:$0xf0]  ;;  %v783_v7 = vor.u32 %v896_v2, %v780_v4  ;;  %v893_v8 = vld [vmem:[#allocation2 + $0x4] sm:$0xf]  ;;  %v768_v9 = vld [vmem:[#allocation2 + $0xc] sm:$0xf0] }
   0xf   :  { %v53_v10 = vld [vmem:[%s1324_s0] sm:$0xff]  ;;  %114 = vmatpush.bf16.msra.mxu2 %v779_v3  ;;  %v767_v11 = vor.u32 %v894_v6, %v766_v5  ;;  %v54_v12 = vld [vmem:[%s1324_s0 + $0x8] sm:$0xff]  ;;  %v771_v15 = vor.u32 %v893_v8, %v768_v9  ;;  %v895_v18 = vld [vmem:[#allocation2 + $0x10] sm:$0xf0]  ;;  %vm104_vm0 = vcmask 261120  }
  0x10   :  { %v786_v13 = vld [vmem:[#allocation2 + $0x20] sm:$0xf]  ;;  %v898_v14 = vld [vmem:[#allocation2 + $0x28] sm:$0xf0]  ;;  %128 = vmatpush.bf16.msra.mxu1 %v783_v7  ;;  %v774_v17 = vld [vmem:[#allocation2 + $0x8] sm:$0xf]  ;;  %v55_v19 = vpack.c.bf16 %v54_v12, %v53_v10 }
  0x11   :  { %v787_v16 = vor.u32 %v898_v14, %v786_v13  ;;  %v775_v20 = vor.u32 %v895_v18, %v774_v17  ;;  %v1053_v21 = vld [vmem:[%s1326_s2] sm:$0x7]  ;;  %v914_v25 = vld [vmem:[#allocation4 + $0x78] sm:$0xff]  ;;  %v912_v37 = vld [vmem:[#allocation4 + $0x68] sm:$0xff] }
  0x12   :  { %v67_v22 = vperm.slane %v1053_v21, 1  ;;  %v66_v26 = vperm.slane %v1053_v21, 0  ;;  %627 = vmatpush.bf16.msra.mxu0 %v914_v25  ;;  %v913_v30 = vld [vmem:[#allocation4 + $0x70] sm:$0xff]  ;;  %v906_v33 = vld [vmem:[#allocation4 + $0x38] sm:$0xff]  ;;  %v911_v46 = vld [vmem:[#allocation4 + $0x60] sm:$0xff]  ;;  %v68_v55 = vperm.slane %v1053_v21, 2 }
  0x13   :  { %115 = vmatpush.bf16.msra.mxu2 %v767_v11  ;;  %613 = vmatpush.bf16.msra.mxu3 %v906_v33  ;;  %v905_v41 = vld [vmem:[#allocation4 + $0x30] sm:$0xff]  ;;  %v904_v50 = vld [vmem:[#allocation4 + $0x28] sm:$0xff]  ;;  %v910_v52 = vld [vmem:[#allocation4 + $0x58] sm:$0xff] }
  0x14   :  { %129 = vmatpush.bf16.msra.mxu1 %v771_v15  ;;  %v903_v58 = vld [vmem:[#allocation4 + $0x20] sm:$0xff]  ;;  %v909_v63 = vld [vmem:[#allocation4 + $0x50] sm:$0xff]  ;;  %v902_v5 = vld [vmem:[#allocation4 + $0x18] sm:$0xff] }
  0x15   :  { %v922_v6 = vld [vmem:[#allocation4 + $0xb8] sm:$0xff]  ;;  %v908_v10 = vld [vmem:[#allocation4 + $0x48] sm:$0xff]  ;;  %v921_v17 = vld [vmem:[#allocation4 + $0xb0] sm:$0xff] }
  0x16   :  { %788 = vmatmul.msk.bf16.vlgmr.msra.gmra.mxu2 %vm104_vm0, %v55_v19  ;;  %628 = vmatpush.bf16.msra.mxu0 %v913_v30  ;;  %v907_v25 = vld [vmem:[#allocation4 + $0x40] sm:$0xff] }
  0x17   :  { %142 = vmatpush.bf16.msrb.mxu2 %v787_v16  ;;  %789 = vmatmul.msk.bf16.vlgmr.msra.gmra.mxu1 %vm104_vm0, %v55_v19  ;;  %v901_v16 = vld [vmem:[#allocation4 + $0x10] sm:$0xff] }
  0x18   :  { %614 = vmatpush.bf16.msra.mxu3 %v905_v41  ;;  %641 = vmatpush.bf16.msrb.mxu1 %v922_v6 }
  0x1a   :  { %629 = vmatpush.bf16.msra.mxu0 %v912_v37 }
  0x1b   :  { %143 = vmatpush.bf16.msrb.mxu2 %v775_v20 }
  0x1c   :  { %615 = vmatpush.bf16.msra.mxu3 %v904_v50  ;;  %642 = vmatpush.bf16.msrb.mxu1 %v921_v17  ;;  %v920_v50 = vld [vmem:[#allocation4 + $0xa8] sm:$0xff] }
  0x1e   :  { %630 = vmatpush.bf16.msra.mxu0 %v911_v46 }
  0x20   :  { %616 = vmatpush.bf16.msra.mxu3 %v903_v58  ;;  %643 = vmatpush.bf16.msrb.mxu1 %v920_v50 }
  0x22   :  { %631 = vmatpush.bf16.msra.mxu0 %v910_v52 }
  0x24   :  { %617 = vmatpush.bf16.msra.mxu3 %v902_v5 }
  0x26   :  { %790 = vmatmul.msk.bf16.vlgmr.msrb.gmra.mxu2 %vm104_vm0, %v55_v19  ;;  %632 = vmatpush.bf16.msra.mxu0 %v909_v63 }
  0x28   :  { %618 = vmatpush.bf16.msra.mxu3 %v901_v16  ;;  %v919_v16 = vld [vmem:[#allocation4 + $0xa0] sm:$0xff] }
  0x29   :  { %644 = vmatpush.bf16.msrb.mxu1 %v919_v16 }
  0x2a   :  { %633 = vmatpush.bf16.msra.mxu0 %v908_v10 }
  0x2e   :  { %634 = vmatpush.bf16.msra.mxu0 %v907_v25 }
  0x94   :  { %v131_v23 = vpop.f32.mrf.mxu1 }
  0x95   :  { %v1056_v24 = vadd.f32 %v131_v23, %v67_v22 }
  0x97   :  { %v1060_v27 = vmul.f32 0.70710677, %v1056_v24 }
  0x99   :  { %v202_v28 = vmul.f32 %v1060_v27, %v1060_v27  ;;  %v117_v29 = vpop.f32.mrf.mxu2 }
  0x9a   :  { %v1066_v31 = vadd.f32 %v117_v29, %v66_v26 }
  0x9b   :  { %v1068_v32 = vmin.f32 %v202_v28, 16.0 }
  0x9c   :  { %v1071_v34 = vmul.f32 0.70710677, %v1066_v31  ;;  %v133_v35 = vpop.f32.mrf.mxu1 }
  0x9d   :  { %v1073_v36 = vadd.f32 %v133_v35, %v67_v22  ;;  %v215_v38 = vmul.f32 3.8918573e-05, %v1068_v32  ;;  %v204_v39 = vmul.f32 2.1237322e-06, %v1068_v32 }
  0x9e   :  { %v162_v42 = vmul.f32 %v1071_v34, %v1071_v34 }
  0x9f   :  { %v1078_v40 = vmul.f32 0.70710677, %v1073_v36  ;;  %v216_v43 = vadd.f32 0.001143296, %v215_v38  ;;  %v205_v48 = vadd.f32 0.00028619796, %v204_v39 }
  0xa0   :  { %v1087_v51 = vmin.f32 %v162_v42, 16.0  ;;  %v900_v39 = vld [vmem:[#allocation4 + $0x8] sm:$0xff] }
  0xa1   :  { %v322_v44 = vmul.f32 %v1078_v40, %v1078_v40  ;;  %v119_v45 = vpop.f32.mrf.mxu2  ;;  %v217_v47 = vmul.f32 %v216_v43, %v1068_v32  ;;  %v206_v57 = vmul.f32 %v205_v48, %v1068_v32  ;;  %619 = vmatpush.bf16.msra.mxu3 %v900_v39 }
  0xa2   :  { %v175_v61 = vmul.f32 3.8918573e-05, %v1087_v51  ;;  %v1120_v38 = vadd.f32 %v119_v45, %v66_v26 }
  0xa3   :  { %v1085_v49 = vmin.f32 %v322_v44, 16.0  ;;  %v218_v53 = vadd.f32 0.014752088, %v217_v47  ;;  %v207_v4 = vadd.f32 0.0036580483, %v206_v57 }
  0xa4   :  { %v176_v8 = vadd.f32 0.001143296, %v175_v61  ;;  %v164_v47 = vmul.f32 2.1237322e-06, %v1087_v51 }
  0xa5   :  { %v324_v54 = vmul.f32 2.1237322e-06, %v1085_v49  ;;  %v335_v56 = vmul.f32 3.8918573e-05, %v1085_v49  ;;  %v219_v59 = vmul.f32 %v218_v53, %v1068_v32  ;;  %v208_v14 = vmul.f32 %v207_v4, %v1068_v32 }
  0xa6   :  { %v177_v20 = vmul.f32 %v176_v8, %v1087_v51  ;;  %v1133_v53 = vmul.f32 0.70710677, %v1120_v38 }
  0xa7   :  { %v336_v60 = vadd.f32 0.001143296, %v335_v56  ;;  %v220_v0 = vadd.f32 0.112945676, %v219_v59  ;;  %v325_v1 = vadd.f32 0.00028619796, %v324_v54 }
  0xa8   :  { %v209_v33 = vadd.f32 0.05243302, %v208_v14  ;;  %v178_v42 = vadd.f32 0.014752088, %v177_v20  ;;  %v165_v59 = vadd.f32 0.00028619796, %v164_v47  ;;  %v282_v5 = vmul.f32 %v1133_v53, %v1133_v53 }
  0xa9   :  { %v145_v62 = vpop.f32.mrf.mxu2  ;;  %v337_v3 = vmul.f32 %v336_v60, %v1085_v49  ;;  %v221_v7 = vmul.f32 %v220_v0, %v1068_v32  ;;  %v326_v12 = vmul.f32 %v325_v1, %v1085_v49 }
  0xaa   :  { %v1095_v2 = vadd.f32 %v145_v62, %v68_v55  ;;  %v210_v45 = vmul.f32 %v209_v33, %v1068_v32  ;;  %v179_v58 = vmul.f32 %v178_v42, %v1087_v51  ;;  %v1157_v25 = vmin.f32 %v282_v5, 16.0 }
  0xab   :  { %v222_v11 = vadd.f32 0.4994258, %v221_v7  ;;  %v338_v13 = vadd.f32 0.014752088, %v337_v3  ;;  %v327_v29 = vadd.f32 0.0036580483, %v326_v12 }
  0xac   :  { %v1100_v9 = vmul.f32 0.70710677, %v1095_v2  ;;  %v211_v4 = vadd.f32 0.18741608, %v210_v45  ;;  %v284_v50 = vmul.f32 2.1237322e-06, %v1157_v25 }
  0xad   :  { %v223_v18 = vmul.f32 %v222_v11, %v1068_v32  ;;  %v339_v19 = vmul.f32 %v338_v13, %v1085_v49  ;;  %v328_v48 = vmul.f32 %v327_v29, %v1085_v49  ;;  %v180_v11 = vadd.f32 0.112945676, %v179_v58 }
  0xae   :  { %v242_v15 = vmul.f32 %v1100_v9, %v1100_v9 }
  0xaf   :  { %v1111_v28 = vadd.f32 1.0, %v223_v18  ;;  %v340_v41 = vadd.f32 0.112945676, %v339_v19  ;;  %v329_v60 = vadd.f32 0.05243302, %v328_v48  ;;  %v181_v42 = vmul.f32 %v180_v11, %v1087_v51 }
  0xb0   :  { %v1109_v22 = vmin.f32 %v242_v15, 16.0  ;;  %v899_v15 = vld [vmem:[#allocation4] sm:$0xff] }
  0xb1   :  { %v147_v23 = vpop.f32.mrf.mxu2  ;;  %930 = vrcp.f32 %v1111_v28  ;;  %v341_v54 = vmul.f32 %v340_v41, %v1085_v49  ;;  %v330_v12 = vmul.f32 %v329_v60, %v1085_v49  ;;  %620 = vmatpush.bf16.msra.mxu3 %v899_v15  ;;  %vm230_vm2 = vweird.f32 %v1111_v28 }
  0xb2   :  { %v1113_v30 = vadd.f32 %v147_v23, %v68_v55  ;;  %v244_v35 = vmul.f32 2.1237322e-06, %v1109_v22  ;;  %v255_v37 = vmul.f32 3.8918573e-05, %v1109_v22  ;;  %v166_v23 = vmul.f32 %v165_v59, %v1087_v51 }
  0xb3   :  { %v342_v62 = vadd.f32 0.4994258, %v341_v54  ;;  %v331_v39 = vadd.f32 0.18741608, %v330_v12  ;;  %v234_v45 = vand.u32 2147483647, %v1111_v28 }
  0xb4   :  { %v245_v43 = vadd.f32 0.00028619796, %v244_v35  ;;  %v256_v44 = vadd.f32 0.001143296, %v255_v37  ;;  %v1123_v46 = vmul.f32 0.70710677, %v1113_v30  ;;  %v212_v37 = vmul.f32 %v211_v4, %v1068_v32 }
  0xb5   :  { %v343_v7 = vmul.f32 %v342_v62, %v1085_v49  ;;  %v167_v48 = vadd.f32 0.0036580483, %v166_v23  ;;  %v332_v58 = vmul.f32 %v331_v39, %v1085_v49  ;;  %vm235_vm4 = vcmp.eq.f32.partialorder %v234_v45, 8.507059e+37 }
  0xb6   :  { %v246_v52 = vmul.f32 %v245_v43, %v1109_v22  ;;  %v257_v21 = vmul.f32 %v256_v44, %v1109_v22  ;;  %v362_v26 = vmul.f32 %v1123_v46, %v1123_v46  ;;  %v213_v62 = vadd.f32 1.1283791, %v212_v37 }
  0xb7   :  { %v1136_v55 = vpop.eup %930  ;;  %v1150_v14 = vadd.f32 1.0, %v343_v7 }
  0xb8   :  { %v258_v56 = vadd.f32 0.014752088, %v257_v21  ;;  %v1138_v57 = vmin.f32 %v362_v26, 16.0  ;;  %v226_v61 = vmul.f32 %v1136_v55, %v1111_v28  ;;  %v247_v63 = vadd.f32 0.0036580483, %v246_v52 }
  0xb9   :  { %932 = vrcp.f32 %v1150_v14  ;;  %vm231_vm1 = vweird.f32 %v1136_v55  ;;  %v236_v21 = vand.u32 2147483648, %v1111_v28  ;;  %v214_v11 = vmul.f32 %v213_v62, %v1060_v27 }
  0xba   :  { %v259_v0 = vmul.f32 %v258_v56, %v1109_v22  ;;  %v364_v1 = vmul.f32 2.1237322e-06, %v1138_v57  ;;  %v375_v3 = vmul.f32 3.8918573e-05, %v1138_v57  ;;  %v227_v6 = vsub.f32 1.0, %v226_v61  ;;  %vm1178_vm3 = vmor %vm230_vm2, %vm231_vm1 }
  0xbb   :  { %v248_v17 = vmul.f32 %v247_v63, %v1109_v22  ;;  %v1175_v56 = vmul.f32 0.5, %v1056_v24  ;;  %v182_v61 = vadd.f32 0.4994258, %v181_v42  ;;  %v168_v24 = vmul.f32 %v167_v48, %v1087_v51 }
  0xbc   :  { %v260_v8 = vadd.f32 0.112945676, %v259_v0  ;;  %v365_v10 = vadd.f32 0.00028619796, %v364_v1  ;;  %v376_v13 = vadd.f32 0.001143296, %v375_v3  ;;  %v228_v20 = vmul.f32 %v1136_v55, %v227_v6 }
  0xbd   :  { %v249_v43 = vadd.f32 0.05243302, %v248_v17  ;;  %v237_v49 = vor.u32 1.1754944e-38, %v236_v21  ;;  %v285_v3 = vadd.f32 0.00028619796, %v284_v50  ;;  %v183_v5 = vmul.f32 %v182_v61, %v1087_v51 }
  0xbe   :  { %v261_v18 = vmul.f32 %v260_v8, %v1109_v22  ;;  %v366_v19 = vmul.f32 %v365_v10, %v1138_v57  ;;  %v377_v29 = vmul.f32 %v376_v13, %v1138_v57  ;;  %v229_v47 = vadd.f32 %v1136_v55, %v228_v20 }
  0xbf   :  { %v933_v54 = vpop.eup %932  ;;  %v250_v63 = vmul.f32 %v249_v43, %v1109_v22  ;;  %v333_v6 = vadd.f32 1.1283791, %v332_v58  ;;  %v295_v13 = vmul.f32 3.8918573e-05, %v1157_v25  ;;  %v354_v17 = vand.u32 2147483647, %v1150_v14 }
  0xc0   :  { %v262_v33 = vadd.f32 0.4994258, %v261_v18  ;;  %v367_v35 = vadd.f32 0.0036580483, %v366_v19  ;;  %v378_v41 = vadd.f32 0.014752088, %v377_v29  ;;  %v233_v28 = vsel %vm1178_vm3, %v1136_v55, %v229_v47 }
  0xc1   :  { %v346_v1 = vmul.f32 %v933_v54, %v1150_v14  ;;  %v238_v8 = vsel %vm235_vm4, %v237_v49, %v233_v28  ;;  %v251_v12 = vadd.f32 0.18741608, %v250_v63  ;;  %v1192_v55 = vadd.f32 1.0, %v183_v5 }
  0xc2   :  { %v263_v44 = vmul.f32 %v262_v33, %v1109_v22  ;;  %v379_v52 = vmul.f32 %v378_v41, %v1138_v57  ;;  %v368_v32 = vmul.f32 %v367_v35, %v1138_v57  ;;  %v356_v18 = vand.u32 2147483648, %v1150_v14 }
  0xc3   :  { %v347_v10 = vsub.f32 1.0, %v346_v1  ;;  %v239_v23 = vmul.f32 %v238_v8, %v214_v11  ;;  %vm351_vm5 = vweird.f32 %v933_v54  ;;  %v334_v27 = vmul.f32 %v333_v6, %v1078_v40 }
  0xc4   :  { %v1169_v26 = vadd.f32 1.0, %v263_v44  ;;  %v380_v59 = vadd.f32 0.112945676, %v379_v52  ;;  %v369_v4 = vadd.f32 0.05243302, %v368_v32  ;;  %v286_v29 = vmul.f32 %v285_v3, %v1157_v25 }
  0xc5   :  { %v348_v16 = vmul.f32 %v933_v54, %v347_v10  ;;  %v252_v37 = vmul.f32 %v251_v12, %v1109_v22  ;;  %vm350_vm6 = vweird.f32 %v1150_v14  ;;  %v296_v41 = vadd.f32 0.001143296, %v295_v13 }
  0xc6   :  { %934 = vrcp.f32 %v1169_v26  ;;  %v381_v0 = vmul.f32 %v380_v59, %v1138_v57  ;;  %v370_v20 = vmul.f32 %v369_v4, %v1138_v57  ;;  %vm352_vm7 = vmor %vm350_vm6, %vm351_vm5  ;;  %vm355_vm8 = vcmp.eq.f32.partialorder %v354_v17, 8.507059e+37 }
  0xc7   :  { %936 = vrcp.f32 %v1192_v55  ;;  %v349_v39 = vadd.f32 %v933_v54, %v348_v16  ;;  %v357_v43 = vor.u32 1.1754944e-38, %v356_v18  ;;  %v792_v40 = vclamps-f32 %v239_v23, 1.0 }
  0xc8   :  { %v382_v7 = vadd.f32 0.4994258, %v381_v0  ;;  %v371_v44 = vadd.f32 0.18741608, %v370_v20  ;;  %v297_v48 = vmul.f32 %v296_v41, %v1157_v25  ;;  %v276_v52 = vand.u32 2147483648, %v1169_v26 }
  0xc9   :  { %v353_v47 = vsel %vm352_vm7, %v933_v54, %v349_v39  ;;  %v169_v14 = vadd.f32 0.05243302, %v168_v24  ;;  %v274_v32 = vand.u32 2147483647, %v1169_v26  ;;  %v287_v59 = vadd.f32 0.0036580483, %v286_v29 }
  0xca   :  { %v383_v15 = vmul.f32 %v382_v7, %v1138_v57  ;;  %v358_v22 = vsel %vm355_vm8, %v357_v43, %v353_v47  ;;  %v298_v58 = vadd.f32 0.014752088, %v297_v48  ;;  %v253_v60 = vadd.f32 1.1283791, %v252_v37  ;;  %v918_v29 = vld [vmem:[#allocation4 + $0x98] sm:$0xff]  ;;  %v915_v54 = vld [vmem:[#allocation4 + $0x80] sm:$0xff] }
  0xcb   :  { %v359_v45 = vmul.f32 %v358_v22, %v334_v27  ;;  %vm270_vm10 = vweird.f32 %v1169_v26  ;;  %v372_v62 = vmul.f32 %v371_v44, %v1138_v57  ;;  %v403_v28 = vadd.f32 1.0, %v792_v40  ;;  %645 = vmatpush.bf16.msrb.mxu1 %v918_v29 }
  0xcc   :  { %v935_v19 = vpop.eup %934  ;;  %v1203_v35 = vadd.f32 1.0, %v383_v15  ;;  %v299_v0 = vmul.f32 %v298_v58, %v1157_v25  ;;  %v154_v49 = vmul.f32 0.5, %v1073_v36  ;;  %v277_v3 = vor.u32 1.1754944e-38, %v276_v52 }
  0xcd   :  { %v266_v33 = vmul.f32 %v935_v19, %v1169_v26  ;;  %vm271_vm9 = vweird.f32 %v935_v19  ;;  %v1210_v21 = vpop.eup %936  ;;  %v795_v63 = vclamps-f32 %v359_v45, 1.0  ;;  %v170_v4 = vmul.f32 %v169_v14, %v1087_v51 }
  0xce   :  { %938 = vrcp.f32 %v1203_v35  ;;  %vm1214_vm11 = vmor %vm270_vm10, %vm271_vm9  ;;  %v186_v26 = vmul.f32 %v1210_v21, %v1192_v55  ;;  %vm275_vm12 = vcmp.eq.f32.partialorder %v274_v32, 8.507059e+37  ;;  %v288_v6 = vmul.f32 %v287_v59, %v1157_v25 }
  0xcf   :  { %v267_v42 = vsub.f32 1.0, %v266_v33  ;;  %v406_v57 = vadd.f32 1.0, %v795_v63  ;;  %v254_v7 = vmul.f32 %v253_v60, %v1100_v9  ;;  %v300_v10 = vadd.f32 0.112945676, %v299_v0 }
  0xd0   :  { %v373_v36 = vadd.f32 1.1283791, %v372_v62  ;;  %v409_v12 = vmul.f32 %v403_v28, %v1175_v56  ;;  %v394_v15 = vand.u32 2147483647, %v1203_v35  ;;  %v396_v16 = vand.u32 2147483648, %v1203_v35 }
  0xd1   :  { %v268_v50 = vmul.f32 %v935_v19, %v267_v42  ;;  %v412_v13 = vmul.f32 %v406_v57, %v154_v49  ;;  %v187_v17 = vsub.f32 1.0, %v186_v26  ;;  %v301_v18 = vmul.f32 %v300_v10, %v1157_v25  ;;  %v917_v42 = vld [vmem:[#allocation4 + $0x90] sm:$0xff] }
  0xd2   :  { %v289_v27 = vadd.f32 0.05243302, %v288_v6  ;;  %vm390_vm14 = vweird.f32 %v1203_v35  ;;  %v171_v56 = vadd.f32 0.18741608, %v170_v4  ;;  %v374_v37 = vmul.f32 %v373_v36, %v1123_v46  ;;  %646 = vmatpush.bf16.msrb.mxu1 %v917_v42  ;;  %v916_v46 = vld [vmem:[#allocation4 + $0x88] sm:$0xff] }
  0xd3   :  { %v269_v61 = vadd.f32 %v935_v19, %v268_v50  ;;  %v415_v23 = vpack.c.bf16 %v412_v13, %v409_v12  ;;  %v302_v9 = vadd.f32 0.4994258, %v301_v18  ;;  %v397_v39 = vor.u32 1.1754944e-38, %v396_v16 }
  0xd4   :  { %v939_v24 = vpop.eup %938  ;;  %vm395_vm0 = vcmp.eq.f32.partialorder %v394_v15, 8.507059e+37  ;;  %v188_v40 = vmul.f32 %v1210_v21, %v187_v17  ;;  %v290_v47 = vmul.f32 %v289_v27, %v1157_v25  ;;  %v172_v52 = vmul.f32 %v171_v56, %v1087_v51 }
  0xd5   :  { %v273_v1 = vsel %vm1214_vm11, %v935_v19, %v269_v61  ;;  %v386_v5 = vmul.f32 %v939_v24, %v1203_v35  ;;  %vm391_vm13 = vweird.f32 %v939_v24  ;;  %635 = vmatmul.bf16.vlgmr.msra.gmra.mxu0 %v415_v23  ;;  %v303_v41 = vmul.f32 %v302_v9, %v1157_v25 }
  0xd6   :  { %v278_v8 = vsel %vm275_vm12, %v277_v3, %v273_v1  ;;  %vm392_vm15 = vmor %vm390_vm14, %vm391_vm13  ;;  %v189_v32 = vadd.f32 %v1210_v21, %v188_v40  ;;  %vm191_vm1 = vweird.f32 %v1210_v21  ;;  %v291_v45 = vadd.f32 0.18741608, %v290_v47  ;;  %647 = vmatpush.bf16.msrb.mxu1 %v916_v46 }
  0xd7   :  { %v387_v11 = vsub.f32 1.0, %v386_v5  ;;  %v279_v19 = vmul.f32 %v278_v8, %v254_v7  ;;  %v304_v50 = vadd.f32 1.0, %v303_v41  ;;  %v152_v58 = vmul.f32 0.5, %v1095_v2 }
  0xd8   :  { %v196_v59 = vand.u32 2147483648, %v1192_v55  ;;  %v155_v60 = vmul.f32 0.5, %v1113_v30  ;;  %vm190_vm2 = vweird.f32 %v1192_v55  ;;  %v194_v51 = vand.u32 2147483647, %v1192_v55 }
  0xd9   :  { %v388_v20 = vmul.f32 %v939_v24, %v387_v11  ;;  %v793_v43 = vclamps-f32 %v279_v19, 1.0  ;;  %940 = vrcp.f32 %v304_v50  ;;  %vm192_vm3 = vmor %vm190_vm2, %vm191_vm1  ;;  %v173_v62 = vadd.f32 1.1283791, %v172_v52 }
  0xda   :  { %v193_v0 = vsel %vm192_vm3, %v1210_v21, %v189_v32  ;;  %v292_v2 = vmul.f32 %v291_v45, %v1157_v25  ;;  %v197_v49 = vor.u32 1.1754944e-38, %v196_v59  ;;  %vm195_vm4 = vcmp.eq.f32.partialorder %v194_v51, 8.507059e+37  ;;  %648 = vmatpush.bf16.msrb.mxu1 %v915_v54 }
  0xdb   :  { %v389_v33 = vadd.f32 %v939_v24, %v388_v20  ;;  %v404_v22 = vadd.f32 1.0, %v793_v43  ;;  %v174_v26 = vmul.f32 %v173_v62, %v1071_v34  ;;  %v316_v5 = vand.u32 2147483648, %v304_v50 }
  0xdc   :  { %v198_v3 = vsel %vm195_vm4, %v197_v49, %v193_v0  ;;  %v293_v4 = vadd.f32 1.1283791, %v292_v2  ;;  %v314_v7 = vand.u32 2147483647, %v304_v50  ;;  %vm310_vm6 = vweird.f32 %v304_v50 }
  0xdd   :  { %v393_v44 = vsel %vm392_vm15, %v939_v24, %v389_v33  ;;  %v410_v63 = vmul.f32 %v404_v22, %v152_v58  ;;  %v199_v57 = vmul.f32 %v198_v3, %v174_v26  ;;  %v317_v25 = vor.u32 1.1754944e-38, %v316_v5 }
  0xde   :  { %v398_v48 = vsel %vm395_vm0, %v397_v39, %v393_v44  ;;  %v294_v8 = vmul.f32 %v293_v4, %v1133_v53  ;;  %vm315_vm8 = vcmp.eq.f32.partialorder %v314_v7, 8.507059e+37  ;;  %v150_v15 = vmul.f32 0.5, %v1066_v31  ;;  %v929_v53 = vld [vmem:[%s1328_s4] ss:$0 sm:$0xff] }
  0xdf   :  { %v399_v35 = vmul.f32 %v398_v48, %v374_v37  ;;  %v941_v24 = vpop.eup %940  ;;  %v791_v10 = vclamps-f32 %v199_v57, 1.0  ;;  %v153_v16 = vmul.f32 0.5, %v1120_v38  ;;  %v655_v23 = vlaneseq }
  0xe0   :  { %v306_v1 = vmul.f32 %v941_v24, %v304_v50  ;;  %vm311_vm5 = vweird.f32 %v941_v24 }
  0xe1   :  { %v796_v14 = vclamps-f32 %v399_v35, 1.0  ;;  %vm312_vm7 = vmor %vm310_vm6, %vm311_vm5  ;;  %v402_v13 = vadd.f32 1.0, %v791_v10  ;;  %v1252_v27 = vand.u32 127, %v655_v23 }
  0xe2   :  { %v307_v55 = vsub.f32 1.0, %v306_v1 }
  0xe3   :  { %v407_v61 = vadd.f32 1.0, %v796_v14  ;;  %v408_v18 = vmul.f32 %v402_v13, %v150_v15  ;;  %vm683_vm9 = vcmp.ge.s32.totalorder %v1252_v27, 7  ;;  %vm684_vm10 = vcmp.lt.s32.totalorder %v1252_v27, 12 }
  0xe4   :  { %v308_v6 = vmul.f32 %v941_v24, %v307_v55  ;;  %vm670_vm11 = vcmp.ge.s32.totalorder %v1252_v27, 4  ;;  %vm671_vm12 = vcmp.lt.s32.totalorder %v1252_v27, 7  ;;  %vm1261_vm13 = vmand %vm683_vm9, %vm684_vm10  ;;  %vm658_vm15 = vcmp.lt.s32.totalorder %v1252_v27, 4 }
  0xe5   :  { %v413_v28 = vmul.f32 %v407_v61, %v155_v60  ;;  %vm1265_vm14 = vmand %vm670_vm11, %vm671_vm12 }
  0xe6   :  { %v309_v21 = vadd.f32 %v941_v24, %v308_v6 }
  0xe7   :  { %v416_v30 = vpack.c.bf16 %v413_v28, %v410_v63 }
  0xe8   :  { %v313_v36 = vsel %vm312_vm7, %v941_v24, %v309_v21 }
  0xe9   :  { %649 = vmatmul.bf16.vlgmr.msrb.gmra.mxu1 %v416_v30  ;;  %v318_v11 = vsel %vm315_vm8, %v317_v25, %v313_v36 }
  0xea   :  { %v319_v12 = vmul.f32 %v318_v11, %v294_v8 }
  0xec   :  { %v794_v34 = vclamps-f32 %v319_v12, 1.0 }
  0xee   :  { %v405_v17 = vadd.f32 1.0, %v794_v34 }
  0xf0   :  { %v411_v19 = vmul.f32 %v405_v17, %v153_v16 }
  0xf2   :  { %v414_v20 = vpack.c.bf16 %v411_v19, %v408_v18 }
  0xf4   :  { %621 = vmatmul.bf16.vlgmr.msra.gmra.mxu3 %v414_v20 }
 0x152   :  { %v636_v9 = vpop.f32.mrf.mxu0 }
 0x15a   :  { %v638_v47 = vpop.f32.mrf.mxu0 }
 0x166   :  { %v650_v33 = vpop.f32.mrf.mxu1 }
 0x16e   :  { %v652_v48 = vpop.f32.mrf.mxu1 }
 0x177   :  { %v622_v29 = vpop.f32.mrf.mxu3 }
 0x178   :  { %v623_v31 = vadd.f32 %v929_v53, %v622_v29 }
 0x17a   :  { %v637_v38 = vadd.f32 %v636_v9, %v623_v31 }
 0x17c   :  { %v651_v39 = vadd.f32 %v650_v33, %v637_v38 }
 0x17e   :  { %v688_v41 = vsel %vm1261_vm13, %v651_v39, -1e+30  ;;  %v675_v42 = vsel %vm1265_vm14, %v651_v39, -1e+30  ;;  %v662_v43 = vsel %vm658_vm15, %v651_v39, -1e+30 }
 0x17f   :  { %v624_v44 = vpop.f32.mrf.mxu3  ;;  %690 = vmax.xlane.f32.xlu2 %v688_v41  ;;  %677 = vmax.xlane.f32.xlu1 %v675_v42 }
 0x180   :  { %v625_v40 = vadd.f32 %v929_v53, %v624_v44  ;;  %664 = vmax.xlane.f32.xlu0 %v662_v43 }
 0x182   :  { %v639_v50 = vadd.f32 %v638_v47, %v625_v40 }
 0x184   :  { %v653_v35 = vadd.f32 %v652_v48, %v639_v50 }
 0x186   :  { %v689_v52 = vsel %vm1261_vm13, %v653_v35, -1e+30  ;;  %v676_v46 = vsel %vm1265_vm14, %v653_v35, -1e+30  ;;  %v663_v22 = vsel %vm658_vm15, %v653_v35, -1e+30 }
 0x187   :  { %692 = vmax.xlane.f32.xlu2 %v689_v52  ;;  %679 = vmax.xlane.f32.xlu1 %v676_v46 }
 0x188   :  { %666 = vmax.xlane.f32.xlu0 %v663_v22 }
 0x1f2   :  { %v678_v14 = vpop.xlane.xlu1 %677  ;;  %v691_v32 = vpop.xlane.xlu2 %690 }
 0x1f3   :  { %v665_v45 = vpop.xlane.xlu0 %664 }
 0x1f4   :  { %v668_v58 = vsel %vm658_vm15, %v665_v45, 0.0 }
 0x1f5   :  { %v681_v59 = vsel %vm1265_vm14, %v678_v14, %v668_v58 }
 0x1f6   :  { %v694_v60 = vsel %vm1261_vm13, %v691_v32, %v681_v59 }
 0x1f7   :  { %v696_v61 = vsub.f32 %v651_v39, %v694_v60 }
 0x1f9   :  { %v698_v51 = vmul.f32 1.442695, %v696_v61 }
 0x1fa   :  { %v680_v54 = vpop.xlane.xlu1 %679  ;;  %v693_v28 = vpop.xlane.xlu2 %692 }
 0x1fb   :  { %942 = vpow2.f32 %v698_v51  ;;  %v667_v62 = vpop.xlane.xlu0 %666 }
 0x1fc   :  { %v669_v63 = vsel %vm658_vm15, %v667_v62, 0.0 }
 0x1fd   :  { %v682_v0 = vsel %vm1265_vm14, %v680_v54, %v669_v63 }
 0x1fe   :  { %v695_v24 = vsel %vm1261_vm13, %v693_v28, %v682_v0 }
 0x1ff   :  { %v697_v2 = vsub.f32 %v653_v35, %v695_v24 }
 0x201   :  { %v943_v49 = vpop.eup %942  ;;  %v700_v1 = vmul.f32 1.442695, %v697_v2 }
 0x202   :  { %v710_v30 = vsel %vm1265_vm14, %v943_v49, 0.0  ;;  %v702_v3 = vsel %vm658_vm15, %v943_v49, 0.0  ;;  %v718_v57 = vsel %vm1261_vm13, %v943_v49, 0.0 }
 0x203   :  { %944 = vpow2.f32 %v700_v1  ;;  %712 = vadd.xlane.f32.xlu2 %v710_v30  ;;  %704 = vadd.xlane.f32.xlu0 %v702_v3 }
 0x209   :  { %v945_v26 = vpop.eup %944 }
 0x20a   :  { %v719_v55 = vsel %vm1261_vm13, %v945_v26, 0.0  ;;  %v711_v4 = vsel %vm1265_vm14, %v945_v26, 0.0  ;;  %v703_v5 = vsel %vm658_vm15, %v945_v26, 0.0 }
 0x20b   :  { %722 = vadd.xlane.f32.xlu2 %v719_v55  ;;  %714 = vadd.xlane.f32.xlu0 %v711_v4 }
 0x20c   :  { %706 = vadd.xlane.f32.xlu1 %v703_v5 }
 0x214   :  { %720 = vadd.xlane.f32.xlu1 %v718_v57 }
 0x276   :  { %v705_v6 = vpop.xlane.xlu0 %704  ;;  %v713_v7 = vpop.xlane.xlu2 %712 }
 0x277   :  { %v708_v12 = vsel %vm658_vm15, %v705_v6, 1.0 }
 0x278   :  { %v716_v34 = vsel %vm1265_vm14, %v713_v7, %v708_v12 }
 0x27e   :  { %v715_v21 = vpop.xlane.xlu0 %714  ;;  %v723_v10 = vpop.xlane.xlu2 %722 }
 0x27f   :  { %v707_v25 = vpop.xlane.xlu1 %706 }
 0x280   :  { %v709_v8 = vsel %vm658_vm15, %v707_v25, 1.0 }
 0x281   :  { %v717_v36 = vsel %vm1265_vm14, %v715_v21, %v709_v8 }
 0x282   :  { %v725_v11 = vsel %vm1261_vm13, %v723_v10, %v717_v36 }
 0x283   :  { %946 = vrcp.f32 %v725_v11  ;;  %v752_v19 = vand.u32 2147483648, %v725_v11  ;;  %v750_v23 = vand.u32 2147483647, %v725_v11  ;;  %vm746_vm1 = vweird.f32 %v725_v11 }
 0x285   :  { %v753_v29 = vor.u32 1.1754944e-38, %v752_v19  ;;  %vm751_vm3 = vcmp.eq.f32.partialorder %v750_v23, 8.507059e+37 }
 0x287   :  { %v721_v13 = vpop.xlane.xlu1 %720 }
 0x288   :  { %v724_v15 = vsel %vm1261_vm13, %v721_v13, %v716_v34 }
 0x289   :  { %v947_v16 = vpop.eup %946  ;;  %948 = vrcp.f32 %v724_v15  ;;  %v737_v56 = vand.u32 2147483648, %v724_v15  ;;  %v735_v41 = vand.u32 2147483647, %v724_v15  ;;  %vm731_vm5 = vweird.f32 %v724_v15 }
 0x28a   :  { %v742_v17 = vmul.f32 %v947_v16, %v725_v11  ;;  %vm747_vm0 = vweird.f32 %v947_v16 }
 0x28b   :  { %vm748_vm2 = vmor %vm746_vm1, %vm747_vm0  ;;  %v738_v43 = vor.u32 1.1754944e-38, %v737_v56  ;;  %vm736_vm7 = vcmp.eq.f32.partialorder %v735_v41, 8.507059e+37 }
 0x28c   :  { %v743_v18 = vsub.f32 1.0, %v742_v17 }
 0x28e   :  { %v744_v20 = vmul.f32 %v947_v16, %v743_v18 }
 0x28f   :  { %v949_v53 = vpop.eup %948 }
 0x290   :  { %v745_v9 = vadd.f32 %v947_v16, %v744_v20  ;;  %v727_v27 = vmul.f32 %v949_v53, %v724_v15  ;;  %vm732_vm4 = vweird.f32 %v949_v53 }
 0x291   :  { %vm733_vm6 = vmor %vm731_vm5, %vm732_vm4 }
 0x292   :  { %v749_v33 = vsel %vm748_vm2, %v947_v16, %v745_v9  ;;  %v728_v31 = vsub.f32 1.0, %v727_v27 }
 0x293   :  { %v754_v38 = vsel %vm751_vm3, %v753_v29, %v749_v33 }
 0x294   :  { %v755_v37 = vmul.f32 %v945_v26, %v754_v38  ;;  %v729_v39 = vmul.f32 %v949_v53, %v728_v31 }
 0x296   :  { %757 = vst [vmem:[%s1329_s5 + $0x8] sm:$0xff] %v755_v37  ;;  %v730_v42 = vadd.f32 %v949_v53, %v729_v39 }
 0x298   :  { %v734_v44 = vsel %vm733_vm6, %v949_v53, %v730_v42 }
 0x299   :  { %v739_v40 = vsel %vm736_vm7, %v738_v43, %v734_v44 }
 0x29a   :  { %v740_v47 = vmul.f32 %v943_v49, %v739_v40 }
 0x29c   :  { %756 = vst [vmem:[%s1329_s5] sm:$0xff] %v740_v47 }
 0x29d   :  { %762 = vsyncpa [#allocation3], 1 }
 0x29e   :  { %763 = vsyncpa [#allocation5], 1 }

</bundles_post_ra>
